<compile_context>
chip_gen: v6e
topology: v6e:2x2x1
jax: 0.10.0
libtpu: 0.0.40
codegen_flags: <defaults>
</compile_context>

<pallas_src>
import functools

import jax
import jax.numpy as jnp
import numpy as np
from jax import lax
from jax.experimental import pallas as pl
from jax.experimental.pallas import tpu as pltpu

EPS = 1e-7


# ---------------------------------------------------------------------------
# Hardware introspection (safe fallbacks: 64 MiB VMEM, 1 TensorCore).
# ---------------------------------------------------------------------------
def _vmem_capacity_bytes():
    try:
        info = pltpu.get_tpu_info()
        cap = getattr(info, "vmem_capacity_bytes", None)
        if isinstance(cap, int) and cap > 0:
            return cap
    except Exception:
        pass
    return 64 << 20  # v7x per-TC capacity: the most conservative choice


def _tensorcore_count():
    try:
        info = pltpu.get_tpu_info()
        for name in ("num_cores", "core_count", "num_tensorcores",
                     "tensorcore_count", "num_tensor_cores"):
            v = getattr(info, name, None)
            if isinstance(v, int) and 1 <= v <= 8:
                return v
    except Exception:
        pass
    return 1  # safe default: v5e/v6e single TensorCore


# ---------------------------------------------------------------------------
# Kernel
# ---------------------------------------------------------------------------
def _make_nalu_kernel(TT, D, T_real, mask_tail, hoist_weights):
    """seq_ref: (TT, BB, 3D) = [ax | gx | mx]; whg_ref: (D, 2D) = [Wh^T | Gh^T];
    out_ref: (TT, BB, D); hid_ref: (BB, D) VMEM-resident hidden carry."""

    def kernel(seq_ref, whg_ref, out_ref, hid_ref):
        c = pl.program_id(1)  # time-chunk index (innermost / "arbitrary" axis)

        @pl.when(c == 0)
        def _():
            # hidden = zeros(*input_shape) from the PyTorch forward
            hid_ref[...] = jnp.zeros_like(hid_ref)

        whg_hoisted = whg_ref[...] if hoist_weights else None

        def step(i, h):
            whg = whg_hoisted if hoist_weights else whg_ref[...]
            bb = h.shape[0]
            # one fused MXU push: [h ; log|h|] @ [Wh^T | Gh^T]
            lhs = jnp.concatenate([h, jnp.log(jnp.abs(h) + EPS)], axis=0)   # (2BB, D)
            res = jnp.dot(lhs, whg, preferred_element_type=jnp.float32)     # (2BB, 2D)
            hg = res[:bb]              # (BB, 2D)  = [h@Wh^T | h@Gh^T]
            mlog = res[bb:, :D]        # (BB, D)   = log|h| @ Wh^T

            xp = seq_ref[i]            # (BB, 3D)  = [ax | gx | mx]
            a = xp[:, :D] + hg[:, :D]
            g = jax.nn.sigmoid(xp[:, D:2 * D] + hg[:, D:])
            m = jnp.exp(xp[:, 2 * D:] + mlog)
            out = g * a + (1.0 - g) * m
            out_ref[i] = out
            if mask_tail:
                t = c * TT + i
                return jnp.where(t < T_real, out, h)   # freeze hidden on padded steps
            return out

        unroll = True if TT <= 32 else 8
        hid_ref[...] = lax.fori_loop(0, TT, step, hid_ref[...], unroll=unroll)

    return kernel


# ---------------------------------------------------------------------------
# Wrapper
# ---------------------------------------------------------------------------
def _pick_tt(T, BB, D, vmem_budget):
    """Largest time-chunk that fits the VMEM budget (double-buffered streams)."""
    per_tt = 2 * (BB * 3 * D * 4) + 2 * (BB * D * 4)          # in + out, 2x buffered
    fixed = 2 * (D * 2 * D * 4) + 2 * (BB * D * 4) + (1 << 20)  # weights + hidden + slack
    tt = max(1, (vmem_budget - fixed) // per_tt)
    return int(max(1, min(tt, T, 512)))


@functools.partial(jax.jit, static_argnames=("batch_first",))
def custom_rnn_forward(x, w_hat, m_hat, g_hat, batch_first=True):
    """x: (batch, input_size, seq) if batch_first else (seq, input_size, batch).

    Returns (output, hidden) like CustomRNN: output has x's layout, hidden is
    returned in step layout (input_size, batch)."""
    hp = jax.lax.Precision.HIGHEST

    if batch_first:
        xt = jnp.transpose(x, (2, 0, 1))      # (B, D, T) -> (T, B, D)
    else:
        xt = jnp.transpose(x, (0, 2, 1))      # (T, D, B) -> (T, B, D)
    T, B, D = xt.shape

    # --- hoisted NALU weight construction (time-invariant) ------------------
    W = jnp.tanh(w_hat) * jax.nn.sigmoid(m_hat)          # (D, 2D)
    Wx, Wh = W[:, :D], W[:, D:]
    Gx, Gh = g_hat[:, :D], g_hat[:, D:]

    # --- one stacked x-projection matmul for the whole sequence -------------
    # [x ; log|x|] (2TB, D) @ [Wx^T | Gx^T] (D, 2D); bottom-right quadrant unused.
    x2 = xt.reshape(T * B, D)
    lhs = jnp.concatenate([x2, jnp.log(jnp.abs(x2) + EPS)], axis=0)       # (2TB, D)
    wxg = jnp.concatenate([Wx.T, Gx.T], axis=1)                           # (D, 2D)
    proj = jnp.dot(lhs, wxg, precision=hp)                                # (2TB, 2D)
    seq = jnp.concatenate([proj[:T * B], proj[T * B:, :D]], axis=1)       # [ax|gx|mx]
    seq = seq.reshape(T, B, 3 * D)

    # --- stacked recurrent weights (single per-step fused dot) --------------
    whg = jnp.concatenate([Wh.T, Gh.T], axis=1)                           # (D, 2D)

    # --- grid sizing: batch shards (only if >1 TC), VMEM-aware time chunks --
    cap = _vmem_capacity_bytes()
    cores = _tensorcore_count()
    NB = cores if (cores > 1 and B % (8 * cores) == 0) else 1
    BB = B // NB

    budget = int(cap * 0.6)
    tt_max = _pick_tt(T, BB, D, budget)
    # prefer an exact divisor of T (no padding) when it is close to tt_max
    div = 1
    for d in range(1, tt_max + 1):
        if T % d == 0:
            div = d
    if div * 4 >= tt_max * 3:
        TT, T_pad = div, T
    else:
        TT = tt_max
        T_pad = ((T + TT - 1) // TT) * TT
        seq = jnp.pad(seq, ((0, T_pad - T), (0, 0), (0, 0)))

    vmem_need = (2 * TT * BB * 3 * D * 4 + 2 * TT * BB * D * 4
                 + 2 * D * 2 * D * 4 + 2 * BB * D * 4)
    vmem_limit = int(min(int(cap * 0.85), max(vmem_need + (8 << 20), 32 << 20)))

    seq_spec = pl.BlockSpec((TT, BB, 3 * D), lambda b, c: (c, b, 0))
    whg_spec = pl.BlockSpec((D, 2 * D), lambda b, c: (0, 0))
    out_spec = pl.BlockSpec((TT, BB, D), lambda b, c: (c, b, 0))
    hid_spec = pl.BlockSpec((BB, D), lambda b, c: (b, 0))

    kernel = _make_nalu_kernel(TT=TT, D=D, T_real=T,
                               mask_tail=(T_pad != T),
                               hoist_weights=(D <= 64))

    out_t, hidden_bd = pl.pallas_call(
        kernel,
        out_shape=(jax.ShapeDtypeStruct((T_pad, B, D), jnp.float32),
                   jax.ShapeDtypeStruct((B, D), jnp.float32)),
        grid_spec=pltpu.PrefetchScalarGridSpec(
            num_scalar_prefetch=0,
            grid=(NB, T_pad // TT),
            in_specs=[seq_spec, whg_spec],
            out_specs=[out_spec, hid_spec],
        ),
        compiler_params=pltpu.CompilerParams(
            dimension_semantics=("parallel", "arbitrary"),
            vmem_limit_bytes=vmem_limit),
    )(seq, whg)

    out_t = out_t[:T]
    if batch_first:
        output = jnp.transpose(out_t, (1, 2, 0))    # (T, B, D) -> (B, D, T)
    else:
        output = jnp.transpose(out_t, (0, 2, 1))    # (T, B, D) -> (T, D, B)
    hidden = jnp.transpose(hidden_bd, (1, 0))       # (B, D) -> (D, B) step layout
    return output, hidden


# ---------------------------------------------------------------------------
# Pure-JAX reference (mirrors the PyTorch loop) for correctness checking.
# ---------------------------------------------------------------------------
def _nalu_cell_ref(x, h, w_hat, m_hat, g_hat):
    hp = jax.lax.Precision.HIGHEST
    W = jnp.tanh(w_hat) * jax.nn.sigmoid(m_hat)
    z = jnp.concatenate([x, h], axis=0)                 # (2D, B)
    a = jnp.dot(W, z, precision=hp)
    g = jax.nn.sigmoid(jnp.dot(g_hat, z, precision=hp))
    m = jnp.exp(jnp.dot(W, jnp.log(jnp.abs(z) + EPS), precision=hp))
    out = g * a + (1.0 - g) * m
    return out, out


def custom_rnn_ref(x, w_hat, m_hat, g_hat, batch_first=True):
    xi = jnp.transpose(x, (2, 1, 0)) if batch_first else x   # (T, D, B)
    h = jnp.zeros(xi.shape[1:], xi.dtype)
    outs = []
    for i in range(xi.shape[0]):
        o, h = _nalu_cell_ref(xi[i], h, w_hat, m_hat, g_hat)
        outs.append(o)
    out = jnp.stack(outs, axis=0)
    if batch_first:
        out = jnp.transpose(out, (2, 1, 0))
    return out, h


if __name__ == "__main__":
    B, D, T = 8, 32, 8          # batch, input_size (== hidden_size), seq

    key = jax.random.PRNGKey(0)
    kx, kw, km, kg = jax.random.split(key, 4)
    x = jax.random.uniform(kx, (B, D, T), jnp.float32, 0.5, 1.5)
    w_hat = 0.1 * jax.random.normal(kw, (D, 2 * D), jnp.float32)
    m_hat = 0.1 * jax.random.normal(km, (D, 2 * D), jnp.float32)
    g_hat = 0.1 * jax.random.normal(kg, (D, 2 * D), jnp.float32)

    out, hidden = jax.block_until_ready(custom_rnn_forward(x, w_hat, m_hat, g_hat))

    out_ref, hid_ref = custom_rnn_ref(x, w_hat, m_hat, g_hat)
    assert out.shape == (B, D, T) and hidden.shape == (D, B)
    np.testing.assert_allclose(np.asarray(out), np.asarray(out_ref),
                               rtol=2e-2, atol=1e-3)
    np.testing.assert_allclose(np.asarray(hidden), np.asarray(hid_ref),
                               rtol=2e-2, atol=1e-3)

    print("KERNEL_OK")
</pallas_src>

<mosaic_0001>
module attributes {stable_mosaic.version = 11 : i64} {
  func.func @kernel(%arg0: i32, %arg1: i32, %arg2: memref<8x8x96xf32, #tpu.memory_space<vmem>>, %arg3: memref<32x64xf32, #tpu.memory_space<vmem>>, %arg4: memref<8x8x32xf32, #tpu.memory_space<vmem>>, %arg5: memref<8x32xf32, #tpu.memory_space<vmem>>) attributes {dimension_semantics = [#tpu.dimension_semantics<parallel>, #tpu.dimension_semantics<arbitrary>], iteration_bounds = array<i64: 1, 1>, scalar_prefetch = 0 : i64, scratch_operands = 0 : i64, tpu.core_type = #tpu.core_type<tc>, window_params = [{transform_indices = @transform_0, window_bounds = array<i64: 8, 8, 96>}, {pipeline_mode = #tpu.pipeline_mode<synchronous>, transform_indices = @transform_1, window_bounds = array<i64: 32, 64>}, {transform_indices = @transform_2, window_bounds = array<i64: 8, 8, 32>}, {transform_indices = @transform_3, window_bounds = array<i64: 8, 32>}]} {
    %c0_i32 = arith.constant 0 : i32
    %0 = arith.cmpi eq, %arg1, %c0_i32 : i32
    %1 = arith.extui %0 : i1 to i32
    %c0_i32_0 = arith.constant 0 : i32
    %2 = arith.cmpi ne, %1, %c0_i32_0 : i32
    scf.if %2 {
      %cst_70 = arith.constant 0.000000e+00 : f32
      %278 = vector.broadcast %cst_70 : f32 to vector<8x32xf32>
      %c0_71 = arith.constant 0 : index
      %c0_72 = arith.constant 0 : index
      %279 = vector.load %arg5[%c0_71, %c0_72] : memref<8x32xf32, #tpu.memory_space<vmem>>, vector<8x32xf32>
      tpu.vector_store %arg5[%c0_71, %c0_72], %278 {strides = array<i32>} : memref<8x32xf32, #tpu.memory_space<vmem>>, vector<8x32xf32>,
    } else {
    }
    %c0 = arith.constant 0 : index
    %c0_1 = arith.constant 0 : index
    %3 = vector.load %arg3[%c0, %c0_1] : memref<32x64xf32, #tpu.memory_space<vmem>>, vector<32x64xf32>
    %c0_2 = arith.constant 0 : index
    %c0_3 = arith.constant 0 : index
    %4 = vector.load %arg5[%c0_2, %c0_3] : memref<8x32xf32, #tpu.memory_space<vmem>>, vector<8x32xf32>
    %c0_i32_4 = arith.constant 0 : i32
    %5 = math.absf %4 : vector<8x32xf32>
    %cst = arith.constant 1.000000e-07 : f32
    %6 = vector.broadcast %cst : f32 to vector<8x32xf32>
    %7 = arith.addf %5, %6 : vector<8x32xf32>
    %8 = math.log %7 : vector<8x32xf32>
    %9 = tpu.concatenate %4, %8 in 0 : vector<8x32xf32>, vector<8x32xf32> -> vector<16x32xf32>
    %cst_5 = arith.constant dense<0.000000e+00> : vector<16x64xf32>
    %10 = tpu.matmul %9, %3, %cst_5 {dimension_numbers = #tpu.dot_dimension_numbers<[1], [0], [0], [1], [0, 0, 1, 1], [], []>} : vector<16x32xf32>, vector<32x64xf32>, vector<16x64xf32> -> vector<16x64xf32>
    %11 = vector.extract_strided_slice %10 {offsets = [0, 0], sizes = [8, 64], strides = [1, 1]} : vector<16x64xf32> to vector<8x64xf32>
    %12 = vector.extract_strided_slice %10 {offsets = [8, 0], sizes = [8, 32], strides = [1, 1]} : vector<16x64xf32> to vector<8x32xf32>
    %13 = arith.index_cast %c0_i32_4 : i32 to index
    %c0_6 = arith.constant 0 : index
    %c0_7 = arith.constant 0 : index
    %14 = vector.load %arg2[%13, %c0_6, %c0_7] : memref<8x8x96xf32, #tpu.memory_space<vmem>>, vector<1x8x96xf32>
    %15 = vector.shape_cast %14 : vector<1x8x96xf32> to vector<8x96xf32>
    %16 = vector.extract_strided_slice %15 {offsets = [0, 0], sizes = [8, 32], strides = [1, 1]} : vector<8x96xf32> to vector<8x32xf32>
    %17 = vector.extract_strided_slice %11 {offsets = [0, 0], sizes = [8, 32], strides = [1, 1]} : vector<8x64xf32> to vector<8x32xf32>
    %18 = arith.addf %16, %17 : vector<8x32xf32>
    %19 = vector.extract_strided_slice %15 {offsets = [0, 32], sizes = [8, 32], strides = [1, 1]} : vector<8x96xf32> to vector<8x32xf32>
    %20 = vector.extract_strided_slice %11 {offsets = [0, 32], sizes = [8, 32], strides = [1, 1]} : vector<8x64xf32> to vector<8x32xf32>
    %21 = arith.addf %19, %20 : vector<8x32xf32>
    %22 = arith.negf %21 : vector<8x32xf32>
    %23 = math.exp %22 : vector<8x32xf32>
    %cst_8 = arith.constant 1.000000e+00 : f32
    %24 = vector.broadcast %cst_8 : f32 to vector<8x32xf32>
    %25 = arith.addf %24, %23 : vector<8x32xf32>
    %26 = arith.divf %24, %25 : vector<8x32xf32>
    %27 = vector.extract_strided_slice %15 {offsets = [0, 64], sizes = [8, 32], strides = [1, 1]} : vector<8x96xf32> to vector<8x32xf32>
    %28 = arith.addf %27, %12 : vector<8x32xf32>
    %29 = math.exp %28 : vector<8x32xf32>
    %30 = arith.mulf %26, %18 : vector<8x32xf32>
    %cst_9 = arith.constant 1.000000e+00 : f32
    %31 = vector.broadcast %cst_9 : f32 to vector<8x32xf32>
    %32 = arith.subf %31, %26 : vector<8x32xf32>
    %33 = arith.mulf %32, %29 : vector<8x32xf32>
    %34 = arith.addf %30, %33 : vector<8x32xf32>
    %35 = arith.index_cast %c0_i32_4 : i32 to index
    %c0_10 = arith.constant 0 : index
    %c0_11 = arith.constant 0 : index
    %36 = vector.load %arg4[%35, %c0_10, %c0_11] : memref<8x8x32xf32, #tpu.memory_space<vmem>>, vector<1x8x32xf32>
    %37 = vector.shape_cast %36 : vector<1x8x32xf32> to vector<8x32xf32>
    %38 = vector.shape_cast %34 : vector<8x32xf32> to vector<1x8x32xf32>
    tpu.vector_store %arg4[%35, %c0_10, %c0_11], %38 {strides = array<i32>} : memref<8x8x32xf32, #tpu.memory_space<vmem>>, vector<1x8x32xf32>,
    %c1_i32 = arith.constant 1 : i32
    %39 = math.absf %34 : vector<8x32xf32>
    %cst_12 = arith.constant 1.000000e-07 : f32
    %40 = vector.broadcast %cst_12 : f32 to vector<8x32xf32>
    %41 = arith.addf %39, %40 : vector<8x32xf32>
    %42 = math.log %41 : vector<8x32xf32>
    %43 = tpu.concatenate %34, %42 in 0 : vector<8x32xf32>, vector<8x32xf32> -> vector<16x32xf32>
    %cst_13 = arith.constant dense<0.000000e+00> : vector<16x64xf32>
    %44 = tpu.matmul %43, %3, %cst_13 {dimension_numbers = #tpu.dot_dimension_numbers<[1], [0], [0], [1], [0, 0, 1, 1], [], []>} : vector<16x32xf32>, vector<32x64xf32>, vector<16x64xf32> -> vector<16x64xf32>
    %45 = vector.extract_strided_slice %44 {offsets = [0, 0], sizes = [8, 64], strides = [1, 1]} : vector<16x64xf32> to vector<8x64xf32>
    %46 = vector.extract_strided_slice %44 {offsets = [8, 0], sizes = [8, 32], strides = [1, 1]} : vector<16x64xf32> to vector<8x32xf32>
    %47 = arith.index_cast %c1_i32 : i32 to index
    %c0_14 = arith.constant 0 : index
    %c0_15 = arith.constant 0 : index
    %48 = vector.load %arg2[%47, %c0_14, %c0_15] : memref<8x8x96xf32, #tpu.memory_space<vmem>>, vector<1x8x96xf32>
    %49 = vector.shape_cast %48 : vector<1x8x96xf32> to vector<8x96xf32>
    %50 = vector.extract_strided_slice %49 {offsets = [0, 0], sizes = [8, 32], strides = [1, 1]} : vector<8x96xf32> to vector<8x32xf32>
    %51 = vector.extract_strided_slice %45 {offsets = [0, 0], sizes = [8, 32], strides = [1, 1]} : vector<8x64xf32> to vector<8x32xf32>
    %52 = arith.addf %50, %51 : vector<8x32xf32>
    %53 = vector.extract_strided_slice %49 {offsets = [0, 32], sizes = [8, 32], strides = [1, 1]} : vector<8x96xf32> to vector<8x32xf32>
    %54 = vector.extract_strided_slice %45 {offsets = [0, 32], sizes = [8, 32], strides = [1, 1]} : vector<8x64xf32> to vector<8x32xf32>
    %55 = arith.addf %53, %54 : vector<8x32xf32>
    %56 = arith.negf %55 : vector<8x32xf32>
    %57 = math.exp %56 : vector<8x32xf32>
    %cst_16 = arith.constant 1.000000e+00 : f32
    %58 = vector.broadcast %cst_16 : f32 to vector<8x32xf32>
    %59 = arith.addf %58, %57 : vector<8x32xf32>
    %60 = arith.divf %58, %59 : vector<8x32xf32>
    %61 = vector.extract_strided_slice %49 {offsets = [0, 64], sizes = [8, 32], strides = [1, 1]} : vector<8x96xf32> to vector<8x32xf32>
    %62 = arith.addf %61, %46 : vector<8x32xf32>
    %63 = math.exp %62 : vector<8x32xf32>
    %64 = arith.mulf %60, %52 : vector<8x32xf32>
    %cst_17 = arith.constant 1.000000e+00 : f32
    %65 = vector.broadcast %cst_17 : f32 to vector<8x32xf32>
    %66 = arith.subf %65, %60 : vector<8x32xf32>
    %67 = arith.mulf %66, %63 : vector<8x32xf32>
    %68 = arith.addf %64, %67 : vector<8x32xf32>
    %69 = arith.index_cast %c1_i32 : i32 to index
    %c0_18 = arith.constant 0 : index
    %c0_19 = arith.constant 0 : index
    %70 = vector.load %arg4[%69, %c0_18, %c0_19] : memref<8x8x32xf32, #tpu.memory_space<vmem>>, vector<1x8x32xf32>
    %71 = vector.shape_cast %70 : vector<1x8x32xf32> to vector<8x32xf32>
    %72 = vector.shape_cast %68 : vector<8x32xf32> to vector<1x8x32xf32>
    tpu.vector_store %arg4[%69, %c0_18, %c0_19], %72 {strides = array<i32>} : memref<8x8x32xf32, #tpu.memory_space<vmem>>, vector<1x8x32xf32>,
    %c2_i32 = arith.constant 2 : i32
    %73 = math.absf %68 : vector<8x32xf32>
    %cst_20 = arith.constant 1.000000e-07 : f32
    %74 = vector.broadcast %cst_20 : f32 to vector<8x32xf32>
    %75 = arith.addf %73, %74 : vector<8x32xf32>
    %76 = math.log %75 : vector<8x32xf32>
    %77 = tpu.concatenate %68, %76 in 0 : vector<8x32xf32>, vector<8x32xf32> -> vector<16x32xf32>
    %cst_21 = arith.constant dense<0.000000e+00> : vector<16x64xf32>
    %78 = tpu.matmul %77, %3, %cst_21 {dimension_numbers = #tpu.dot_dimension_numbers<[1], [0], [0], [1], [0, 0, 1, 1], [], []>} : vector<16x32xf32>, vector<32x64xf32>, vector<16x64xf32> -> vector<16x64xf32>
    %79 = vector.extract_strided_slice %78 {offsets = [0, 0], sizes = [8, 64], strides = [1, 1]} : vector<16x64xf32> to vector<8x64xf32>
    %80 = vector.extract_strided_slice %78 {offsets = [8, 0], sizes = [8, 32], strides = [1, 1]} : vector<16x64xf32> to vector<8x32xf32>
    %81 = arith.index_cast %c2_i32 : i32 to index
    %c0_22 = arith.constant 0 : index
    %c0_23 = arith.constant 0 : index
    %82 = vector.load %arg2[%81, %c0_22, %c0_23] : memref<8x8x96xf32, #tpu.memory_space<vmem>>, vector<1x8x96xf32>
    %83 = vector.shape_cast %82 : vector<1x8x96xf32> to vector<8x96xf32>
    %84 = vector.extract_strided_slice %83 {offsets = [0, 0], sizes = [8, 32], strides = [1, 1]} : vector<8x96xf32> to vector<8x32xf32>
    %85 = vector.extract_strided_slice %79 {offsets = [0, 0], sizes = [8, 32], strides = [1, 1]} : vector<8x64xf32> to vector<8x32xf32>
    %86 = arith.addf %84, %85 : vector<8x32xf32>
    %87 = vector.extract_strided_slice %83 {offsets = [0, 32], sizes = [8, 32], strides = [1, 1]} : vector<8x96xf32> to vector<8x32xf32>
    %88 = vector.extract_strided_slice %79 {offsets = [0, 32], sizes = [8, 32], strides = [1, 1]} : vector<8x64xf32> to vector<8x32xf32>
    %89 = arith.addf %87, %88 : vector<8x32xf32>
    %90 = arith.negf %89 : vector<8x32xf32>
    %91 = math.exp %90 : vector<8x32xf32>
    %cst_24 = arith.constant 1.000000e+00 : f32
    %92 = vector.broadcast %cst_24 : f32 to vector<8x32xf32>
    %93 = arith.addf %92, %91 : vector<8x32xf32>
    %94 = arith.divf %92, %93 : vector<8x32xf32>
    %95 = vector.extract_strided_slice %83 {offsets = [0, 64], sizes = [8, 32], strides = [1, 1]} : vector<8x96xf32> to vector<8x32xf32>
    %96 = arith.addf %95, %80 : vector<8x32xf32>
    %97 = math.exp %96 : vector<8x32xf32>
    %98 = arith.mulf %94, %86 : vector<8x32xf32>
    %cst_25 = arith.constant 1.000000e+00 : f32
    %99 = vector.broadcast %cst_25 : f32 to vector<8x32xf32>
    %100 = arith.subf %99, %94 : vector<8x32xf32>
    %101 = arith.mulf %100, %97 : vector<8x32xf32>
    %102 = arith.addf %98, %101 : vector<8x32xf32>
    %103 = arith.index_cast %c2_i32 : i32 to index
    %c0_26 = arith.constant 0 : index
    %c0_27 = arith.constant 0 : index
    %104 = vector.load %arg4[%103, %c0_26, %c0_27] : memref<8x8x32xf32, #tpu.memory_space<vmem>>, vector<1x8x32xf32>
    %105 = vector.shape_cast %104 : vector<1x8x32xf32> to vector<8x32xf32>
    %106 = vector.shape_cast %102 : vector<8x32xf32> to vector<1x8x32xf32>
    tpu.vector_store %arg4[%103, %c0_26, %c0_27], %106 {strides = array<i32>} : memref<8x8x32xf32, #tpu.memory_space<vmem>>, vector<1x8x32xf32>,
    %c3_i32 = arith.constant 3 : i32
    %107 = math.absf %102 : vector<8x32xf32>
    %cst_28 = arith.constant 1.000000e-07 : f32
    %108 = vector.broadcast %cst_28 : f32 to vector<8x32xf32>
    %109 = arith.addf %107, %108 : vector<8x32xf32>
    %110 = math.log %109 : vector<8x32xf32>
    %111 = tpu.concatenate %102, %110 in 0 : vector<8x32xf32>, vector<8x32xf32> -> vector<16x32xf32>
    %cst_29 = arith.constant dense<0.000000e+00> : vector<16x64xf32>
    %112 = tpu.matmul %111, %3, %cst_29 {dimension_numbers = #tpu.dot_dimension_numbers<[1], [0], [0], [1], [0, 0, 1, 1], [], []>} : vector<16x32xf32>, vector<32x64xf32>, vector<16x64xf32> -> vector<16x64xf32>
    %113 = vector.extract_strided_slice %112 {offsets = [0, 0], sizes = [8, 64], strides = [1, 1]} : vector<16x64xf32> to vector<8x64xf32>
    %114 = vector.extract_strided_slice %112 {offsets = [8, 0], sizes = [8, 32], strides = [1, 1]} : vector<16x64xf32> to vector<8x32xf32>
    %115 = arith.index_cast %c3_i32 : i32 to index
    %c0_30 = arith.constant 0 : index
    %c0_31 = arith.constant 0 : index
    %116 = vector.load %arg2[%115, %c0_30, %c0_31] : memref<8x8x96xf32, #tpu.memory_space<vmem>>, vector<1x8x96xf32>
    %117 = vector.shape_cast %116 : vector<1x8x96xf32> to vector<8x96xf32>
    %118 = vector.extract_strided_slice %117 {offsets = [0, 0], sizes = [8, 32], strides = [1, 1]} : vector<8x96xf32> to vector<8x32xf32>
    %119 = vector.extract_strided_slice %113 {offsets = [0, 0], sizes = [8, 32], strides = [1, 1]} : vector<8x64xf32> to vector<8x32xf32>
    %120 = arith.addf %118, %119 : vector<8x32xf32>
    %121 = vector.extract_strided_slice %117 {offsets = [0, 32], sizes = [8, 32], strides = [1, 1]} : vector<8x96xf32> to vector<8x32xf32>
    %122 = vector.extract_strided_slice %113 {offsets = [0, 32], sizes = [8, 32], strides = [1, 1]} : vector<8x64xf32> to vector<8x32xf32>
    %123 = arith.addf %121, %122 : vector<8x32xf32>
    %124 = arith.negf %123 : vector<8x32xf32>
    %125 = math.exp %124 : vector<8x32xf32>
    %cst_32 = arith.constant 1.000000e+00 : f32
    %126 = vector.broadcast %cst_32 : f32 to vector<8x32xf32>
    %127 = arith.addf %126, %125 : vector<8x32xf32>
    %128 = arith.divf %126, %127 : vector<8x32xf32>
    %129 = vector.extract_strided_slice %117 {offsets = [0, 64], sizes = [8, 32], strides = [1, 1]} : vector<8x96xf32> to vector<8x32xf32>
    %130 = arith.addf %129, %114 : vector<8x32xf32>
    %131 = math.exp %130 : vector<8x32xf32>
    %132 = arith.mulf %128, %120 : vector<8x32xf32>
    %cst_33 = arith.constant 1.000000e+00 : f32
    %133 = vector.broadcast %cst_33 : f32 to vector<8x32xf32>
    %134 = arith.subf %133, %128 : vector<8x32xf32>
    %135 = arith.mulf %134, %131 : vector<8x32xf32>
    %136 = arith.addf %132, %135 : vector<8x32xf32>
    %137 = arith.index_cast %c3_i32 : i32 to index
    %c0_34 = arith.constant 0 : index
    %c0_35 = arith.constant 0 : index
    %138 = vector.load %arg4[%137, %c0_34, %c0_35] : memref<8x8x32xf32, #tpu.memory_space<vmem>>, vector<1x8x32xf32>
    %139 = vector.shape_cast %138 : vector<1x8x32xf32> to vector<8x32xf32>
    %140 = vector.shape_cast %136 : vector<8x32xf32> to vector<1x8x32xf32>
    tpu.vector_store %arg4[%137, %c0_34, %c0_35], %140 {strides = array<i32>} : memref<8x8x32xf32, #tpu.memory_space<vmem>>, vector<1x8x32xf32>,
    %c4_i32 = arith.constant 4 : i32
    %141 = math.absf %136 : vector<8x32xf32>
    %cst_36 = arith.constant 1.000000e-07 : f32
    %142 = vector.broadcast %cst_36 : f32 to vector<8x32xf32>
    %143 = arith.addf %141, %142 : vector<8x32xf32>
    %144 = math.log %143 : vector<8x32xf32>
    %145 = tpu.concatenate %136, %144 in 0 : vector<8x32xf32>, vector<8x32xf32> -> vector<16x32xf32>
    %cst_37 = arith.constant dense<0.000000e+00> : vector<16x64xf32>
    %146 = tpu.matmul %145, %3, %cst_37 {dimension_numbers = #tpu.dot_dimension_numbers<[1], [0], [0], [1], [0, 0, 1, 1], [], []>} : vector<16x32xf32>, vector<32x64xf32>, vector<16x64xf32> -> vector<16x64xf32>
    %147 = vector.extract_strided_slice %146 {offsets = [0, 0], sizes = [8, 64], strides = [1, 1]} : vector<16x64xf32> to vector<8x64xf32>
    %148 = vector.extract_strided_slice %146 {offsets = [8, 0], sizes = [8, 32], strides = [1, 1]} : vector<16x64xf32> to vector<8x32xf32>
    %149 = arith.index_cast %c4_i32 : i32 to index
    %c0_38 = arith.constant 0 : index
    %c0_39 = arith.constant 0 : index
    %150 = vector.load %arg2[%149, %c0_38, %c0_39] : memref<8x8x96xf32, #tpu.memory_space<vmem>>, vector<1x8x96xf32>
    %151 = vector.shape_cast %150 : vector<1x8x96xf32> to vector<8x96xf32>
    %152 = vector.extract_strided_slice %151 {offsets = [0, 0], sizes = [8, 32], strides = [1, 1]} : vector<8x96xf32> to vector<8x32xf32>
    %153 = vector.extract_strided_slice %147 {offsets = [0, 0], sizes = [8, 32], strides = [1, 1]} : vector<8x64xf32> to vector<8x32xf32>
    %154 = arith.addf %152, %153 : vector<8x32xf32>
    %155 = vector.extract_strided_slice %151 {offsets = [0, 32], sizes = [8, 32], strides = [1, 1]} : vector<8x96xf32> to vector<8x32xf32>
    %156 = vector.extract_strided_slice %147 {offsets = [0, 32], sizes = [8, 32], strides = [1, 1]} : vector<8x64xf32> to vector<8x32xf32>
    %157 = arith.addf %155, %156 : vector<8x32xf32>
    %158 = arith.negf %157 : vector<8x32xf32>
    %159 = math.exp %158 : vector<8x32xf32>
    %cst_40 = arith.constant 1.000000e+00 : f32
    %160 = vector.broadcast %cst_40 : f32 to vector<8x32xf32>
    %161 = arith.addf %160, %159 : vector<8x32xf32>
    %162 = arith.divf %160, %161 : vector<8x32xf32>
    %163 = vector.extract_strided_slice %151 {offsets = [0, 64], sizes = [8, 32], strides = [1, 1]} : vector<8x96xf32> to vector<8x32xf32>
    %164 = arith.addf %163, %148 : vector<8x32xf32>
    %165 = math.exp %164 : vector<8x32xf32>
    %166 = arith.mulf %162, %154 : vector<8x32xf32>
    %cst_41 = arith.constant 1.000000e+00 : f32
    %167 = vector.broadcast %cst_41 : f32 to vector<8x32xf32>
    %168 = arith.subf %167, %162 : vector<8x32xf32>
    %169 = arith.mulf %168, %165 : vector<8x32xf32>
    %170 = arith.addf %166, %169 : vector<8x32xf32>
    %171 = arith.index_cast %c4_i32 : i32 to index
    %c0_42 = arith.constant 0 : index
    %c0_43 = arith.constant 0 : index
    %172 = vector.load %arg4[%171, %c0_42, %c0_43] : memref<8x8x32xf32, #tpu.memory_space<vmem>>, vector<1x8x32xf32>
    %173 = vector.shape_cast %172 : vector<1x8x32xf32> to vector<8x32xf32>
    %174 = vector.shape_cast %170 : vector<8x32xf32> to vector<1x8x32xf32>
    tpu.vector_store %arg4[%171, %c0_42, %c0_43], %174 {strides = array<i32>} : memref<8x8x32xf32, #tpu.memory_space<vmem>>, vector<1x8x32xf32>,
    %c5_i32 = arith.constant 5 : i32
    %175 = math.absf %170 : vector<8x32xf32>
    %cst_44 = arith.constant 1.000000e-07 : f32
    %176 = vector.broadcast %cst_44 : f32 to vector<8x32xf32>
    %177 = arith.addf %175, %176 : vector<8x32xf32>
    %178 = math.log %177 : vector<8x32xf32>
    %179 = tpu.concatenate %170, %178 in 0 : vector<8x32xf32>, vector<8x32xf32> -> vector<16x32xf32>
    %cst_45 = arith.constant dense<0.000000e+00> : vector<16x64xf32>
    %180 = tpu.matmul %179, %3, %cst_45 {dimension_numbers = #tpu.dot_dimension_numbers<[1], [0], [0], [1], [0, 0, 1, 1], [], []>} : vector<16x32xf32>, vector<32x64xf32>, vector<16x64xf32> -> vector<16x64xf32>
    %181 = vector.extract_strided_slice %180 {offsets = [0, 0], sizes = [8, 64], strides = [1, 1]} : vector<16x64xf32> to vector<8x64xf32>
    %182 = vector.extract_strided_slice %180 {offsets = [8, 0], sizes = [8, 32], strides = [1, 1]} : vector<16x64xf32> to vector<8x32xf32>
    %183 = arith.index_cast %c5_i32 : i32 to index
    %c0_46 = arith.constant 0 : index
    %c0_47 = arith.constant 0 : index
    %184 = vector.load %arg2[%183, %c0_46, %c0_47] : memref<8x8x96xf32, #tpu.memory_space<vmem>>, vector<1x8x96xf32>
    %185 = vector.shape_cast %184 : vector<1x8x96xf32> to vector<8x96xf32>
    %186 = vector.extract_strided_slice %185 {offsets = [0, 0], sizes = [8, 32], strides = [1, 1]} : vector<8x96xf32> to vector<8x32xf32>
    %187 = vector.extract_strided_slice %181 {offsets = [0, 0], sizes = [8, 32], strides = [1, 1]} : vector<8x64xf32> to vector<8x32xf32>
    %188 = arith.addf %186, %187 : vector<8x32xf32>
    %189 = vector.extract_strided_slice %185 {offsets = [0, 32], sizes = [8, 32], strides = [1, 1]} : vector<8x96xf32> to vector<8x32xf32>
    %190 = vector.extract_strided_slice %181 {offsets = [0, 32], sizes = [8, 32], strides = [1, 1]} : vector<8x64xf32> to vector<8x32xf32>
    %191 = arith.addf %189, %190 : vector<8x32xf32>
    %192 = arith.negf %191 : vector<8x32xf32>
    %193 = math.exp %192 : vector<8x32xf32>
    %cst_48 = arith.constant 1.000000e+00 : f32
    %194 = vector.broadcast %cst_48 : f32 to vector<8x32xf32>
    %195 = arith.addf %194, %193 : vector<8x32xf32>
    %196 = arith.divf %194, %195 : vector<8x32xf32>
    %197 = vector.extract_strided_slice %185 {offsets = [0, 64], sizes = [8, 32], strides = [1, 1]} : vector<8x96xf32> to vector<8x32xf32>
    %198 = arith.addf %197, %182 : vector<8x32xf32>
    %199 = math.exp %198 : vector<8x32xf32>
    %200 = arith.mulf %196, %188 : vector<8x32xf32>
    %cst_49 = arith.constant 1.000000e+00 : f32
    %201 = vector.broadcast %cst_49 : f32 to vector<8x32xf32>
    %202 = arith.subf %201, %196 : vector<8x32xf32>
    %203 = arith.mulf %202, %199 : vector<8x32xf32>
    %204 = arith.addf %200, %203 : vector<8x32xf32>
    %205 = arith.index_cast %c5_i32 : i32 to index
    %c0_50 = arith.constant 0 : index
    %c0_51 = arith.constant 0 : index
    %206 = vector.load %arg4[%205, %c0_50, %c0_51] : memref<8x8x32xf32, #tpu.memory_space<vmem>>, vector<1x8x32xf32>
    %207 = vector.shape_cast %206 : vector<1x8x32xf32> to vector<8x32xf32>
    %208 = vector.shape_cast %204 : vector<8x32xf32> to vector<1x8x32xf32>
    tpu.vector_store %arg4[%205, %c0_50, %c0_51], %208 {strides = array<i32>} : memref<8x8x32xf32, #tpu.memory_space<vmem>>, vector<1x8x32xf32>,
    %c6_i32 = arith.constant 6 : i32
    %209 = math.absf %204 : vector<8x32xf32>
    %cst_52 = arith.constant 1.000000e-07 : f32
    %210 = vector.broadcast %cst_52 : f32 to vector<8x32xf32>
    %211 = arith.addf %209, %210 : vector<8x32xf32>
    %212 = math.log %211 : vector<8x32xf32>
    %213 = tpu.concatenate %204, %212 in 0 : vector<8x32xf32>, vector<8x32xf32> -> vector<16x32xf32>
    %cst_53 = arith.constant dense<0.000000e+00> : vector<16x64xf32>
    %214 = tpu.matmul %213, %3, %cst_53 {dimension_numbers = #tpu.dot_dimension_numbers<[1], [0], [0], [1], [0, 0, 1, 1], [], []>} : vector<16x32xf32>, vector<32x64xf32>, vector<16x64xf32> -> vector<16x64xf32>
    %215 = vector.extract_strided_slice %214 {offsets = [0, 0], sizes = [8, 64], strides = [1, 1]} : vector<16x64xf32> to vector<8x64xf32>
    %216 = vector.extract_strided_slice %214 {offsets = [8, 0], sizes = [8, 32], strides = [1, 1]} : vector<16x64xf32> to vector<8x32xf32>
    %217 = arith.index_cast %c6_i32 : i32 to index
    %c0_54 = arith.constant 0 : index
    %c0_55 = arith.constant 0 : index
    %218 = vector.load %arg2[%217, %c0_54, %c0_55] : memref<8x8x96xf32, #tpu.memory_space<vmem>>, vector<1x8x96xf32>
    %219 = vector.shape_cast %218 : vector<1x8x96xf32> to vector<8x96xf32>
    %220 = vector.extract_strided_slice %219 {offsets = [0, 0], sizes = [8, 32], strides = [1, 1]} : vector<8x96xf32> to vector<8x32xf32>
    %221 = vector.extract_strided_slice %215 {offsets = [0, 0], sizes = [8, 32], strides = [1, 1]} : vector<8x64xf32> to vector<8x32xf32>
    %222 = arith.addf %220, %221 : vector<8x32xf32>
    %223 = vector.extract_strided_slice %219 {offsets = [0, 32], sizes = [8, 32], strides = [1, 1]} : vector<8x96xf32> to vector<8x32xf32>
    %224 = vector.extract_strided_slice %215 {offsets = [0, 32], sizes = [8, 32], strides = [1, 1]} : vector<8x64xf32> to vector<8x32xf32>
    %225 = arith.addf %223, %224 : vector<8x32xf32>
    %226 = arith.negf %225 : vector<8x32xf32>
    %227 = math.exp %226 : vector<8x32xf32>
    %cst_56 = arith.constant 1.000000e+00 : f32
    %228 = vector.broadcast %cst_56 : f32 to vector<8x32xf32>
    %229 = arith.addf %228, %227 : vector<8x32xf32>
    %230 = arith.divf %228, %229 : vector<8x32xf32>
    %231 = vector.extract_strided_slice %219 {offsets = [0, 64], sizes = [8, 32], strides = [1, 1]} : vector<8x96xf32> to vector<8x32xf32>
    %232 = arith.addf %231, %216 : vector<8x32xf32>
    %233 = math.exp %232 : vector<8x32xf32>
    %234 = arith.mulf %230, %222 : vector<8x32xf32>
    %cst_57 = arith.constant 1.000000e+00 : f32
    %235 = vector.broadcast %cst_57 : f32 to vector<8x32xf32>
    %236 = arith.subf %235, %230 : vector<8x32xf32>
    %237 = arith.mulf %236, %233 : vector<8x32xf32>
    %238 = arith.addf %234, %237 : vector<8x32xf32>
    %239 = arith.index_cast %c6_i32 : i32 to index
    %c0_58 = arith.constant 0 : index
    %c0_59 = arith.constant 0 : index
    %240 = vector.load %arg4[%239, %c0_58, %c0_59] : memref<8x8x32xf32, #tpu.memory_space<vmem>>, vector<1x8x32xf32>
    %241 = vector.shape_cast %240 : vector<1x8x32xf32> to vector<8x32xf32>
    %242 = vector.shape_cast %238 : vector<8x32xf32> to vector<1x8x32xf32>
    tpu.vector_store %arg4[%239, %c0_58, %c0_59], %242 {strides = array<i32>} : memref<8x8x32xf32, #tpu.memory_space<vmem>>, vector<1x8x32xf32>,
    %c7_i32 = arith.constant 7 : i32
    %243 = math.absf %238 : vector<8x32xf32>
    %cst_60 = arith.constant 1.000000e-07 : f32
    %244 = vector.broadcast %cst_60 : f32 to vector<8x32xf32>
    %245 = arith.addf %243, %244 : vector<8x32xf32>
    %246 = math.log %245 : vector<8x32xf32>
    %247 = tpu.concatenate %238, %246 in 0 : vector<8x32xf32>, vector<8x32xf32> -> vector<16x32xf32>
    %cst_61 = arith.constant dense<0.000000e+00> : vector<16x64xf32>
    %248 = tpu.matmul %247, %3, %cst_61 {dimension_numbers = #tpu.dot_dimension_numbers<[1], [0], [0], [1], [0, 0, 1, 1], [], []>} : vector<16x32xf32>, vector<32x64xf32>, vector<16x64xf32> -> vector<16x64xf32>
    %249 = vector.extract_strided_slice %248 {offsets = [0, 0], sizes = [8, 64], strides = [1, 1]} : vector<16x64xf32> to vector<8x64xf32>
    %250 = vector.extract_strided_slice %248 {offsets = [8, 0], sizes = [8, 32], strides = [1, 1]} : vector<16x64xf32> to vector<8x32xf32>
    %251 = arith.index_cast %c7_i32 : i32 to index
    %c0_62 = arith.constant 0 : index
    %c0_63 = arith.constant 0 : index
    %252 = vector.load %arg2[%251, %c0_62, %c0_63] : memref<8x8x96xf32, #tpu.memory_space<vmem>>, vector<1x8x96xf32>
    %253 = vector.shape_cast %252 : vector<1x8x96xf32> to vector<8x96xf32>
    %254 = vector.extract_strided_slice %253 {offsets = [0, 0], sizes = [8, 32], strides = [1, 1]} : vector<8x96xf32> to vector<8x32xf32>
    %255 = vector.extract_strided_slice %249 {offsets = [0, 0], sizes = [8, 32], strides = [1, 1]} : vector<8x64xf32> to vector<8x32xf32>
    %256 = arith.addf %254, %255 : vector<8x32xf32>
    %257 = vector.extract_strided_slice %253 {offsets = [0, 32], sizes = [8, 32], strides = [1, 1]} : vector<8x96xf32> to vector<8x32xf32>
    %258 = vector.extract_strided_slice %249 {offsets = [0, 32], sizes = [8, 32], strides = [1, 1]} : vector<8x64xf32> to vector<8x32xf32>
    %259 = arith.addf %257, %258 : vector<8x32xf32>
    %260 = arith.negf %259 : vector<8x32xf32>
    %261 = math.exp %260 : vector<8x32xf32>
    %cst_64 = arith.constant 1.000000e+00 : f32
    %262 = vector.broadcast %cst_64 : f32 to vector<8x32xf32>
    %263 = arith.addf %262, %261 : vector<8x32xf32>
    %264 = arith.divf %262, %263 : vector<8x32xf32>
    %265 = vector.extract_strided_slice %253 {offsets = [0, 64], sizes = [8, 32], strides = [1, 1]} : vector<8x96xf32> to vector<8x32xf32>
    %266 = arith.addf %265, %250 : vector<8x32xf32>
    %267 = math.exp %266 : vector<8x32xf32>
    %268 = arith.mulf %264, %256 : vector<8x32xf32>
    %cst_65 = arith.constant 1.000000e+00 : f32
    %269 = vector.broadcast %cst_65 : f32 to vector<8x32xf32>
    %270 = arith.subf %269, %264 : vector<8x32xf32>
    %271 = arith.mulf %270, %267 : vector<8x32xf32>
    %272 = arith.addf %268, %271 : vector<8x32xf32>
    %273 = arith.index_cast %c7_i32 : i32 to index
    %c0_66 = arith.constant 0 : index
    %c0_67 = arith.constant 0 : index
    %274 = vector.load %arg4[%273, %c0_66, %c0_67] : memref<8x8x32xf32, #tpu.memory_space<vmem>>, vector<1x8x32xf32>
    %275 = vector.shape_cast %274 : vector<1x8x32xf32> to vector<8x32xf32>
    %276 = vector.shape_cast %272 : vector<8x32xf32> to vector<1x8x32xf32>
    tpu.vector_store %arg4[%273, %c0_66, %c0_67], %276 {strides = array<i32>} : memref<8x8x32xf32, #tpu.memory_space<vmem>>, vector<1x8x32xf32>,
    %c8_i32 = arith.constant 8 : i32
    %c0_68 = arith.constant 0 : index
    %c0_69 = arith.constant 0 : index
    %277 = vector.load %arg5[%c0_68, %c0_69] : memref<8x32xf32, #tpu.memory_space<vmem>>, vector<8x32xf32>
    tpu.vector_store %arg5[%c0_68, %c0_69], %272 {strides = array<i32>} : memref<8x32xf32, #tpu.memory_space<vmem>>, vector<8x32xf32>,
    return
  }
  func.func @transform_0(%arg0: i32, %arg1: i32) -> (i32, i32, i32) {
    %c0_i32 = arith.constant 0 : i32
    %c0_i32_0 = arith.constant 0 : i32
    return %arg1, %arg0, %c0_i32 : i32, i32, i32
  }
  func.func @transform_1(%arg0: i32, %arg1: i32) -> (i32, i32) {
    %c0_i32 = arith.constant 0 : i32
    %c0_i32_0 = arith.constant 0 : i32
    %c0_i32_1 = arith.constant 0 : i32
    return %c0_i32, %c0_i32_0 : i32, i32
  }
  func.func @transform_2(%arg0: i32, %arg1: i32) -> (i32, i32, i32) {
    %c0_i32 = arith.constant 0 : i32
    %c0_i32_0 = arith.constant 0 : i32
    return %arg1, %arg0, %c0_i32 : i32, i32, i32
  }
  func.func @transform_3(%arg0: i32, %arg1: i32) -> (i32, i32) {
    %c0_i32 = arith.constant 0 : i32
    %c0_i32_0 = arith.constant 0 : i32
    return %arg0, %c0_i32 : i32, i32
  }
}

</mosaic_0001>

<bundles_post_ra>
// kernel: custom_rnn_forward.1
= control target key start
LH: loop header
LB: loop body
LE: loop exit
PB: predicated region body
PF: predicated region fallthrough
CT: control target
= control target key end

     0   :  { %vm18_vm0 = vcmask 261120   ;;  %v1267_v2 = vmov 0.0   ;;  %s1492_s0 = inlined_call_operand.vmem [shape: f32[8,8,96], index: 0, kind: input, shape index: {}]   ;;  %s1493_s1 = inlined_call_operand.vmem [shape: f32[32,64], index: 1, kind: input, shape index: {}]   ;;  %s1494_s2 = inlined_call_operand.vmem [shape: f32[8,8,32], index: 2, kind: output, shape index: {0}]   ;;  %s1495_s3 = inlined_call_operand.hbm [shape: f32[8,32], index: 3, kind: output, shape index: {1}]  }
   0x1   :  { %v1295_v0 = vld [vmem:[%s1493_s1 + $0x18] sm:$0xff]  ;;  %v1300_v1 = vld [vmem:[%s1493_s1 + $0x10] sm:$0xff]  ;;  %19 = vst.msk [vmem:[#allocation2] sm:$0xff] %vm18_vm0, %v1267_v2 }
   0x2   :  { %1088 = vmatprep.subr.mxu0 %v1295_v0  ;;  %1099 = vmatprep.subr.mxu1 %v1295_v0 }
   0x3   :  { %9 = vsyncpa [#allocation3], 0  ;;  %1089 = vmatpush3.msra.mxu0 %v1295_v0  ;;  %v1309_v3 = vld [vmem:[%s1493_s1 + $0x8] sm:$0xff]  ;;  %1100 = vmatpush3.msra.mxu1 %v1295_v0  ;;  %v1318_v4 = vld [vmem:[%s1493_s1] sm:$0xff]  ;;  %s1268_s21 = smov 64   ;;  %s1269_s22 = smov 32  }
   0x4   :  { %1090 = vmatprep.subr.mxu0 %v1300_v1  ;;  %1101 = vmatprep.subr.mxu1 %v1300_v1  ;;  %v111_v11 = vld [vmem:[%s1492_s0] sm:$0xff]  ;;  %s1270_s23 = smov 96   ;;  %v1007_v35 = vld [vmem:[%s1492_s0 + $0x8] sm:$0xff]  ;;  %v1012_v59 = vld [vmem:[%s1492_s0 + $0x10] sm:$0xff] }
   0x5   :  { %1091 = vmatpush3.msra.mxu0 %v1300_v1  ;;  %1102 = vmatpush3.msra.mxu1 %v1300_v1 }
   0x6   :  { %1092 = vmatprep.subr.mxu0 %v1309_v3  ;;  %1103 = vmatprep.subr.mxu1 %v1309_v3 }
   0x7   :  { %1093 = vmatpush3.msra.mxu0 %v1309_v3  ;;  %1104 = vmatpush3.msra.mxu1 %v1309_v3 }
   0x8   :  { %1094 = vmatprep.subr.mxu0 %v1318_v4  ;;  %1105 = vmatprep.subr.mxu1 %v1318_v4  ;;  %v24_v5 = vld [vmem:[#allocation2] sm:$0xff] }
   0x9   :  { %1095 = vmatpush3.msra.mxu0 %v1318_v4  ;;  %1106 = vmatpush3.msra.mxu1 %v1318_v4  ;;  %v25_v6 = vand.u32 2147483647, %v24_v5 }
   0xa   :  { %1096 = vmatprep.mubr.msk.f32.mxu0 %vm18_vm0, %v24_v5  ;;  %1110 = vmatprep.subr.mxu0 %v1295_v0 }
   0xb   :  { %1121 = vmatprep.subr.mxu1 %v1295_v0  ;;  %v26_v7 = vadd.f32 1e-07, %v25_v6 }
   0xd   :  { %1181 = vlog2.f32 %v26_v7 }
  0x1a   :  { %v1182_v8 = vpop.eup %1181 }
  0x1b   :  { %v28_v9 = vmul.f32 0.6931472, %v1182_v8 }
  0x1d   :  { %1097 = vmatmul.mubr.msk.f32.vlgmr.msra.gmra.mxu0 %vm18_vm0, %v28_v9 }
  0x1e   :  { %1111 = vmatpush3.msra.mxu0 %v1295_v0 }
  0x1f   :  { %1112 = vmatprep.subr.mxu0 %v1300_v1 }
  0x20   :  { %1113 = vmatpush3.msra.mxu0 %v1300_v1 }
  0x21   :  { %1114 = vmatprep.subr.mxu0 %v1309_v3 }
  0x22   :  { %1115 = vmatpush3.msra.mxu0 %v1309_v3 }
  0x23   :  { %1116 = vmatprep.subr.mxu0 %v1318_v4 }
  0x24   :  { %1117 = vmatpush3.msra.mxu0 %v1318_v4 }
  0x25   :  { %1132 = vmatprep.subr.mxu0 %v1295_v0 }
  0xdd   :  { %v1098_v10 = vpop.f32.mrf.mxu0 }
  0xde   :  { %120 = vrot.lane.b32.xlu0 %v1098_v10, %s1268_s21 }
  0xdf   :  { %v102_v12 = vpop.f32.mrf.mxu0 }
  0xe0   :  { %v112_v13 = vadd.f32 %v111_v11, %v102_v12 }
  0xe2   :  { %127 = vrot.lane.b32.xlu0 %v112_v13, %s1269_s22  ;;  %v1004_v18 = vmul.f32 -1.442695, %v112_v13 }
 0x150   :  { %v121_v14 = vpop.permute.xlu0 %120 }
 0x151   :  { %v123_v15 = vadd.f32 %v121_v14, %v111_v11 }
 0x153   :  { %v124_v16 = vmul.f32 1.442695, %v123_v15 }
 0x154   :  { %v128_v22 = vpop.permute.xlu0 %127 }
 0x155   :  { %1183 = vpow2.f32 %v124_v16 }
 0x156   :  { %1185 = vpow2.f32 %v1004_v18 }
 0x162   :  { %v1184_v17 = vpop.eup %1183 }
 0x163   :  { %133 = vrot.lane.b32.xlu1 %v1184_v17, %s1270_s23  ;;  %v1186_v19 = vpop.eup %1185 }
 0x164   :  { %v116_v20 = vadd.f32 1.0, %v1186_v19 }
 0x166   :  { %1187 = vrcp.f32 %v116_v20 }
 0x173   :  { %v1188_v21 = vpop.eup %1187 }
 0x174   :  { %v131_v23 = vsub.f32 1.0, %v1188_v21  ;;  %v130_v25 = vmul.f32 %v1188_v21, %v128_v22 }
 0x1d5   :  { %v134_v24 = vpop.permute.xlu1 %133 }
 0x1d6   :  { %v136_v26 = vmul.f32 %v134_v24, %v131_v23  ;;  %v1017_v23 = vld [vmem:[%s1492_s0 + $0x18] sm:$0xff] }
 0x1d8   :  { %v137_v27 = vadd.f32 %v136_v26, %v130_v25 }
 0x1da   :  { %v143_v28 = vand.u32 2147483647, %v137_v27  ;;  %139 = vrot.lane.b32.xlu1 %v137_v27, %s1270_s23 }
 0x1dc   :  { %v144_v29 = vadd.f32 1e-07, %v143_v28 }
 0x1de   :  { %1189 = vlog2.f32 %v144_v29 }
 0x1eb   :  { %v1190_v30 = vpop.eup %1189 }
 0x1ec   :  { %v146_v31 = vmul.f32 0.6931472, %v1190_v30 }
 0x1ee   :  { %148 = vrot.lane.b32.xlu0 %v146_v31, %s1270_s23 }
 0x24c   :  { %v140_v32 = vpop.permute.xlu1 %139 }
 0x24d   :  { %142 = vst.msk [vmem:[%s1494_s2] sm:$0xff] %vm18_vm0, %v140_v32  ;;  %1107 = vmatprep.mubr.msk.f32.mxu1 %vm18_vm0, %v140_v32 }
 0x260   :  { %v149_v33 = vpop.permute.xlu0 %148 }
 0x261   :  { %1108 = vmatmul.mubr.msk.f32.vlgmr.msra.gmra.mxu1 %vm18_vm0, %v149_v33 }
 0x262   :  { %1122 = vmatpush3.msra.mxu1 %v1295_v0 }
 0x263   :  { %1123 = vmatprep.subr.mxu1 %v1300_v1 }
 0x264   :  { %1124 = vmatpush3.msra.mxu1 %v1300_v1 }
 0x265   :  { %1125 = vmatprep.subr.mxu1 %v1309_v3 }
 0x266   :  { %1126 = vmatpush3.msra.mxu1 %v1309_v3 }
 0x267   :  { %1127 = vmatprep.subr.mxu1 %v1318_v4 }
 0x268   :  { %1128 = vmatpush3.msra.mxu1 %v1318_v4 }
 0x269   :  { %1143 = vmatprep.subr.mxu1 %v1295_v0 }
 0x321   :  { %v1109_v34 = vpop.f32.mrf.mxu1 }
 0x322   :  { %239 = vrot.lane.b32.xlu1 %v1109_v34, %s1268_s21 }
 0x323   :  { %v220_v36 = vpop.f32.mrf.mxu1 }
 0x324   :  { %v231_v37 = vadd.f32 %v1007_v35, %v220_v36 }
 0x326   :  { %246 = vrot.lane.b32.xlu0 %v231_v37, %s1269_s22  ;;  %v1008_v42 = vmul.f32 -1.442695, %v231_v37 }
 0x394   :  { %v240_v38 = vpop.permute.xlu1 %239 }
 0x395   :  { %v242_v39 = vadd.f32 %v1007_v35, %v240_v38 }
 0x397   :  { %v243_v40 = vmul.f32 1.442695, %v242_v39 }
 0x398   :  { %v247_v46 = vpop.permute.xlu0 %246 }
 0x399   :  { %1191 = vpow2.f32 %v243_v40 }
 0x39a   :  { %1193 = vpow2.f32 %v1008_v42 }
 0x3a6   :  { %v1192_v41 = vpop.eup %1191 }
 0x3a7   :  { %252 = vrot.lane.b32.xlu1 %v1192_v41, %s1270_s23  ;;  %v1194_v43 = vpop.eup %1193 }
 0x3a8   :  { %v235_v44 = vadd.f32 1.0, %v1194_v43 }
 0x3aa   :  { %1195 = vrcp.f32 %v235_v44 }
 0x3b7   :  { %v1196_v45 = vpop.eup %1195 }
 0x3b8   :  { %v250_v47 = vsub.f32 1.0, %v1196_v45  ;;  %v249_v49 = vmul.f32 %v1196_v45, %v247_v46 }
 0x419   :  { %v253_v48 = vpop.permute.xlu1 %252 }
 0x41a   :  { %v255_v50 = vmul.f32 %v253_v48, %v250_v47  ;;  %v1022_v47 = vld [vmem:[%s1492_s0 + $0x20] sm:$0xff] }
 0x41c   :  { %v256_v51 = vadd.f32 %v255_v50, %v249_v49 }
 0x41e   :  { %v263_v52 = vand.u32 2147483647, %v256_v51  ;;  %258 = vrot.lane.b32.xlu0 %v256_v51, %s1270_s23 }
 0x420   :  { %v264_v53 = vadd.f32 1e-07, %v263_v52 }
 0x422   :  { %1197 = vlog2.f32 %v264_v53 }
 0x42f   :  { %v1198_v54 = vpop.eup %1197 }
 0x430   :  { %v266_v55 = vmul.f32 0.6931472, %v1198_v54 }
 0x432   :  { %268 = vrot.lane.b32.xlu1 %v266_v55, %s1270_s23 }
 0x490   :  { %v259_v56 = vpop.permute.xlu0 %258 }
 0x491   :  { %1009 = vst.msk [vmem:[%s1494_s2 + $0x8] sm:$0xff] %vm18_vm0, %v259_v56  ;;  %1118 = vmatprep.mubr.msk.f32.mxu0 %vm18_vm0, %v259_v56 }
 0x4a4   :  { %v269_v57 = vpop.permute.xlu1 %268 }
 0x4a5   :  { %1119 = vmatmul.mubr.msk.f32.vlgmr.msra.gmra.mxu0 %vm18_vm0, %v269_v57 }
 0x4a6   :  { %1133 = vmatpush3.msra.mxu0 %v1295_v0 }
 0x4a7   :  { %1134 = vmatprep.subr.mxu0 %v1300_v1 }
 0x4a8   :  { %1135 = vmatpush3.msra.mxu0 %v1300_v1 }
 0x4a9   :  { %1136 = vmatprep.subr.mxu0 %v1309_v3 }
 0x4aa   :  { %1137 = vmatpush3.msra.mxu0 %v1309_v3 }
 0x4ab   :  { %1138 = vmatprep.subr.mxu0 %v1318_v4 }
 0x4ac   :  { %1139 = vmatpush3.msra.mxu0 %v1318_v4 }
 0x4ad   :  { %1154 = vmatprep.subr.mxu0 %v1295_v0 }
 0x565   :  { %v1120_v58 = vpop.f32.mrf.mxu0 }
 0x566   :  { %359 = vrot.lane.b32.xlu0 %v1120_v58, %s1268_s21 }
 0x567   :  { %v340_v60 = vpop.f32.mrf.mxu0 }
 0x568   :  { %v351_v61 = vadd.f32 %v1012_v59, %v340_v60 }
 0x56a   :  { %366 = vrot.lane.b32.xlu1 %v351_v61, %s1269_s22  ;;  %v1013_v6 = vmul.f32 -1.442695, %v351_v61 }
 0x5d8   :  { %v360_v62 = vpop.permute.xlu0 %359 }
 0x5d9   :  { %v362_v63 = vadd.f32 %v1012_v59, %v360_v62 }
 0x5db   :  { %v363_v2 = vmul.f32 1.442695, %v362_v63 }
 0x5dc   :  { %v367_v10 = vpop.permute.xlu1 %366 }
 0x5dd   :  { %1199 = vpow2.f32 %v363_v2 }
 0x5de   :  { %1201 = vpow2.f32 %v1013_v6 }
 0x5ea   :  { %v1200_v5 = vpop.eup %1199 }
 0x5eb   :  { %372 = vrot.lane.b32.xlu0 %v1200_v5, %s1270_s23  ;;  %v1202_v7 = vpop.eup %1201 }
 0x5ec   :  { %v355_v8 = vadd.f32 1.0, %v1202_v7 }
 0x5ee   :  { %1203 = vrcp.f32 %v355_v8 }
 0x5fb   :  { %v1204_v9 = vpop.eup %1203 }
 0x5fc   :  { %v370_v11 = vsub.f32 1.0, %v1204_v9  ;;  %v369_v13 = vmul.f32 %v1204_v9, %v367_v10 }
 0x65d   :  { %v373_v12 = vpop.permute.xlu0 %372 }
 0x65e   :  { %v375_v14 = vmul.f32 %v373_v12, %v370_v11  ;;  %v1027_v11 = vld [vmem:[%s1492_s0 + $0x28] sm:$0xff] }
 0x660   :  { %v376_v15 = vadd.f32 %v375_v14, %v369_v13 }
 0x662   :  { %v383_v16 = vand.u32 2147483647, %v376_v15  ;;  %378 = vrot.lane.b32.xlu1 %v376_v15, %s1270_s23 }
 0x664   :  { %v384_v17 = vadd.f32 1e-07, %v383_v16 }
 0x666   :  { %1205 = vlog2.f32 %v384_v17 }
 0x673   :  { %v1206_v18 = vpop.eup %1205 }
 0x674   :  { %v386_v19 = vmul.f32 0.6931472, %v1206_v18 }
 0x676   :  { %388 = vrot.lane.b32.xlu0 %v386_v19, %s1270_s23 }
 0x6d4   :  { %v379_v20 = vpop.permute.xlu1 %378 }
 0x6d5   :  { %1014 = vst.msk [vmem:[%s1494_s2 + $0x10] sm:$0xff] %vm18_vm0, %v379_v20  ;;  %1129 = vmatprep.mubr.msk.f32.mxu1 %vm18_vm0, %v379_v20 }
 0x6e8   :  { %v389_v21 = vpop.permute.xlu0 %388 }
 0x6e9   :  { %1130 = vmatmul.mubr.msk.f32.vlgmr.msra.gmra.mxu1 %vm18_vm0, %v389_v21 }
 0x6ea   :  { %1144 = vmatpush3.msra.mxu1 %v1295_v0 }
 0x6eb   :  { %1145 = vmatprep.subr.mxu1 %v1300_v1 }
 0x6ec   :  { %1146 = vmatpush3.msra.mxu1 %v1300_v1 }
 0x6ed   :  { %1147 = vmatprep.subr.mxu1 %v1309_v3 }
 0x6ee   :  { %1148 = vmatpush3.msra.mxu1 %v1309_v3 }
 0x6ef   :  { %1149 = vmatprep.subr.mxu1 %v1318_v4 }
 0x6f0   :  { %1150 = vmatpush3.msra.mxu1 %v1318_v4 }
 0x6f1   :  { %1165 = vmatprep.subr.mxu1 %v1295_v0 }
 0x7a9   :  { %v1131_v22 = vpop.f32.mrf.mxu1 }
 0x7aa   :  { %479 = vrot.lane.b32.xlu1 %v1131_v22, %s1268_s21 }
 0x7ab   :  { %v460_v24 = vpop.f32.mrf.mxu1 }
 0x7ac   :  { %v471_v25 = vadd.f32 %v1017_v23, %v460_v24 }
 0x7ae   :  { %486 = vrot.lane.b32.xlu0 %v471_v25, %s1269_s22  ;;  %v1018_v30 = vmul.f32 -1.442695, %v471_v25 }
 0x81c   :  { %v480_v26 = vpop.permute.xlu1 %479 }
 0x81d   :  { %v482_v27 = vadd.f32 %v1017_v23, %v480_v26 }
 0x81f   :  { %v483_v28 = vmul.f32 1.442695, %v482_v27 }
 0x820   :  { %v487_v34 = vpop.permute.xlu0 %486 }
 0x821   :  { %1207 = vpow2.f32 %v483_v28 }
 0x822   :  { %1209 = vpow2.f32 %v1018_v30 }
 0x82e   :  { %v1208_v29 = vpop.eup %1207 }
 0x82f   :  { %492 = vrot.lane.b32.xlu1 %v1208_v29, %s1270_s23  ;;  %v1210_v31 = vpop.eup %1209 }
 0x830   :  { %v475_v32 = vadd.f32 1.0, %v1210_v31  ;;  %v1032_v31 = vld [vmem:[%s1492_s0 + $0x30] sm:$0xff] }
 0x832   :  { %1211 = vrcp.f32 %v475_v32 }
 0x83f   :  { %v1212_v33 = vpop.eup %1211 }
 0x840   :  { %v490_v35 = vsub.f32 1.0, %v1212_v33  ;;  %v489_v37 = vmul.f32 %v1212_v33, %v487_v34 }
 0x8a1   :  { %v493_v36 = vpop.permute.xlu1 %492 }
 0x8a2   :  { %v495_v38 = vmul.f32 %v493_v36, %v490_v35 }
 0x8a4   :  { %v496_v39 = vadd.f32 %v495_v38, %v489_v37 }
 0x8a6   :  { %v503_v40 = vand.u32 2147483647, %v496_v39  ;;  %498 = vrot.lane.b32.xlu0 %v496_v39, %s1270_s23 }
 0x8a8   :  { %v504_v41 = vadd.f32 1e-07, %v503_v40 }
 0x8aa   :  { %1213 = vlog2.f32 %v504_v41 }
 0x8b7   :  { %v1214_v42 = vpop.eup %1213 }
 0x8b8   :  { %v506_v43 = vmul.f32 0.6931472, %v1214_v42 }
 0x8ba   :  { %508 = vrot.lane.b32.xlu1 %v506_v43, %s1270_s23 }
 0x918   :  { %v499_v44 = vpop.permute.xlu0 %498 }
 0x919   :  { %1019 = vst.msk [vmem:[%s1494_s2 + $0x18] sm:$0xff] %vm18_vm0, %v499_v44  ;;  %1140 = vmatprep.mubr.msk.f32.mxu0 %vm18_vm0, %v499_v44 }
 0x92c   :  { %v509_v45 = vpop.permute.xlu1 %508 }
 0x92d   :  { %1141 = vmatmul.mubr.msk.f32.vlgmr.msra.gmra.mxu0 %vm18_vm0, %v509_v45 }
 0x92e   :  { %1155 = vmatpush3.msra.mxu0 %v1295_v0 }
 0x92f   :  { %1156 = vmatprep.subr.mxu0 %v1300_v1 }
 0x930   :  { %1157 = vmatpush3.msra.mxu0 %v1300_v1 }
 0x931   :  { %1158 = vmatprep.subr.mxu0 %v1309_v3 }
 0x932   :  { %1159 = vmatpush3.msra.mxu0 %v1309_v3 }
 0x933   :  { %1160 = vmatprep.subr.mxu0 %v1318_v4 }
 0x934   :  { %1161 = vmatpush3.msra.mxu0 %v1318_v4 }
 0x9ed   :  { %v1142_v46 = vpop.f32.mrf.mxu0 }
 0x9ee   :  { %599 = vrot.lane.b32.xlu0 %v1142_v46, %s1268_s21 }
 0x9ef   :  { %v580_v48 = vpop.f32.mrf.mxu0 }
 0x9f0   :  { %v591_v49 = vadd.f32 %v1022_v47, %v580_v48 }
 0x9f2   :  { %606 = vrot.lane.b32.xlu1 %v591_v49, %s1269_s22  ;;  %v1023_v54 = vmul.f32 -1.442695, %v591_v49 }
 0xa60   :  { %v600_v50 = vpop.permute.xlu0 %599 }
 0xa61   :  { %v602_v51 = vadd.f32 %v1022_v47, %v600_v50 }
 0xa63   :  { %v603_v52 = vmul.f32 1.442695, %v602_v51 }
 0xa64   :  { %v607_v58 = vpop.permute.xlu1 %606 }
 0xa65   :  { %1215 = vpow2.f32 %v603_v52 }
 0xa66   :  { %1217 = vpow2.f32 %v1023_v54 }
 0xa72   :  { %v1216_v53 = vpop.eup %1215 }
 0xa73   :  { %612 = vrot.lane.b32.xlu0 %v1216_v53, %s1270_s23  ;;  %v1218_v55 = vpop.eup %1217 }
 0xa74   :  { %v595_v56 = vadd.f32 1.0, %v1218_v55  ;;  %v1037_v55 = vld [vmem:[%s1492_s0 + $0x38] sm:$0xff]  ;;  %s1271_s0 = smov [#allocation2]  }
 0xa76   :  { %1219 = vrcp.f32 %v595_v56 }
 0xa83   :  { %v1220_v57 = vpop.eup %1219 }
 0xa84   :  { %v610_v59 = vsub.f32 1.0, %v1220_v57  ;;  %v609_v61 = vmul.f32 %v1220_v57, %v607_v58 }
 0xae5   :  { %v613_v60 = vpop.permute.xlu0 %612 }
 0xae6   :  { %v615_v62 = vmul.f32 %v613_v60, %v610_v59 }
 0xae8   :  { %v616_v63 = vadd.f32 %v615_v62, %v609_v61 }
 0xaea   :  { %v623_v2 = vand.u32 2147483647, %v616_v63  ;;  %618 = vrot.lane.b32.xlu1 %v616_v63, %s1270_s23 }
 0xaec   :  { %v624_v5 = vadd.f32 1e-07, %v623_v2 }
 0xaee   :  { %1221 = vlog2.f32 %v624_v5 }
 0xafb   :  { %v1222_v6 = vpop.eup %1221 }
 0xafc   :  { %v626_v7 = vmul.f32 0.6931472, %v1222_v6 }
 0xafe   :  { %628 = vrot.lane.b32.xlu0 %v626_v7, %s1270_s23 }
 0xb5c   :  { %v619_v8 = vpop.permute.xlu1 %618 }
 0xb5d   :  { %1024 = vst.msk [vmem:[%s1494_s2 + $0x20] sm:$0xff] %vm18_vm0, %v619_v8  ;;  %1151 = vmatprep.mubr.msk.f32.mxu1 %vm18_vm0, %v619_v8 }
 0xb70   :  { %v629_v9 = vpop.permute.xlu0 %628 }
 0xb71   :  { %1152 = vmatmul.mubr.msk.f32.vlgmr.msra.gmra.mxu1 %vm18_vm0, %v629_v9 }
 0xb72   :  { %1166 = vmatpush3.msra.mxu1 %v1295_v0 }
 0xb73   :  { %1167 = vmatprep.subr.mxu1 %v1300_v1 }
 0xb74   :  { %1168 = vmatpush3.msra.mxu1 %v1300_v1 }
 0xb75   :  { %1169 = vmatprep.subr.mxu1 %v1309_v3 }
 0xb76   :  { %1170 = vmatpush3.msra.mxu1 %v1309_v3 }
 0xb77   :  { %1171 = vmatprep.subr.mxu1 %v1318_v4 }
 0xb78   :  { %1172 = vmatpush3.msra.mxu1 %v1318_v4 }
 0xc31   :  { %v1153_v10 = vpop.f32.mrf.mxu1 }
 0xc32   :  { %719 = vrot.lane.b32.xlu1 %v1153_v10, %s1268_s21 }
 0xc33   :  { %v700_v0 = vpop.f32.mrf.mxu1 }
 0xc34   :  { %v711_v12 = vadd.f32 %v1027_v11, %v700_v0 }
 0xc36   :  { %726 = vrot.lane.b32.xlu0 %v711_v12, %s1269_s22  ;;  %v1028_v15 = vmul.f32 -1.442695, %v711_v12 }
 0xca4   :  { %v720_v1 = vpop.permute.xlu1 %719 }
 0xca5   :  { %v722_v13 = vadd.f32 %v1027_v11, %v720_v1 }
 0xca7   :  { %v723_v14 = vmul.f32 1.442695, %v722_v13 }
 0xca8   :  { %v727_v18 = vpop.permute.xlu0 %726 }
 0xca9   :  { %1223 = vpow2.f32 %v723_v14 }
 0xcaa   :  { %1225 = vpow2.f32 %v1028_v15 }
 0xcb6   :  { %v1224_v3 = vpop.eup %1223 }
 0xcb7   :  { %732 = vrot.lane.b32.xlu1 %v1224_v3, %s1270_s23  ;;  %v1226_v4 = vpop.eup %1225 }
 0xcb8   :  { %v715_v16 = vadd.f32 1.0, %v1226_v4 }
 0xcba   :  { %1227 = vrcp.f32 %v715_v16 }
 0xcc7   :  { %v1228_v17 = vpop.eup %1227 }
 0xcc8   :  { %v730_v19 = vsub.f32 1.0, %v1228_v17  ;;  %v729_v21 = vmul.f32 %v1228_v17, %v727_v18 }
 0xd29   :  { %v733_v20 = vpop.permute.xlu1 %732 }
 0xd2a   :  { %v735_v22 = vmul.f32 %v733_v20, %v730_v19 }
 0xd2c   :  { %v736_v23 = vadd.f32 %v735_v22, %v729_v21 }
 0xd2e   :  { %v743_v24 = vand.u32 2147483647, %v736_v23  ;;  %738 = vrot.lane.b32.xlu0 %v736_v23, %s1270_s23 }
 0xd30   :  { %v744_v25 = vadd.f32 1e-07, %v743_v24 }
 0xd32   :  { %1229 = vlog2.f32 %v744_v25 }
 0xd3f   :  { %v1230_v26 = vpop.eup %1229 }
 0xd40   :  { %v746_v27 = vmul.f32 0.6931472, %v1230_v26 }
 0xd42   :  { %748 = vrot.lane.b32.xlu1 %v746_v27, %s1270_s23 }
 0xda0   :  { %v739_v28 = vpop.permute.xlu0 %738 }
 0xda1   :  { %1029 = vst.msk [vmem:[%s1494_s2 + $0x28] sm:$0xff] %vm18_vm0, %v739_v28  ;;  %1162 = vmatprep.mubr.msk.f32.mxu0 %vm18_vm0, %v739_v28 }
 0xdb4   :  { %v749_v29 = vpop.permute.xlu1 %748 }
 0xdb5   :  { %1163 = vmatmul.mubr.msk.f32.vlgmr.msra.gmra.mxu0 %vm18_vm0, %v749_v29 }
 0xe75   :  { %v1164_v30 = vpop.f32.mrf.mxu0 }
 0xe76   :  { %839 = vrot.lane.b32.xlu0 %v1164_v30, %s1268_s21 }
 0xe77   :  { %v820_v32 = vpop.f32.mrf.mxu0 }
 0xe78   :  { %v831_v33 = vadd.f32 %v1032_v31, %v820_v32 }
 0xe7a   :  { %846 = vrot.lane.b32.xlu1 %v831_v33, %s1269_s22  ;;  %v1033_v38 = vmul.f32 -1.442695, %v831_v33 }
 0xee8   :  { %v840_v34 = vpop.permute.xlu0 %839 }
 0xee9   :  { %v842_v35 = vadd.f32 %v1032_v31, %v840_v34 }
 0xeeb   :  { %v843_v36 = vmul.f32 1.442695, %v842_v35 }
 0xeec   :  { %v847_v42 = vpop.permute.xlu1 %846 }
 0xeed   :  { %1231 = vpow2.f32 %v843_v36 }
 0xeee   :  { %1233 = vpow2.f32 %v1033_v38 }
 0xefa   :  { %v1232_v37 = vpop.eup %1231 }
 0xefb   :  { %852 = vrot.lane.b32.xlu0 %v1232_v37, %s1270_s23  ;;  %v1234_v39 = vpop.eup %1233 }
 0xefc   :  { %v835_v40 = vadd.f32 1.0, %v1234_v39 }
 0xefe   :  { %1235 = vrcp.f32 %v835_v40 }
 0xf0b   :  { %v1236_v41 = vpop.eup %1235 }
 0xf0c   :  { %v850_v43 = vsub.f32 1.0, %v1236_v41  ;;  %v849_v45 = vmul.f32 %v1236_v41, %v847_v42 }
 0xf6d   :  { %v853_v44 = vpop.permute.xlu0 %852 }
 0xf6e   :  { %v855_v46 = vmul.f32 %v853_v44, %v850_v43 }
 0xf70   :  { %v856_v47 = vadd.f32 %v855_v46, %v849_v45 }
 0xf72   :  { %v863_v48 = vand.u32 2147483647, %v856_v47  ;;  %858 = vrot.lane.b32.xlu1 %v856_v47, %s1270_s23 }
 0xf74   :  { %v864_v49 = vadd.f32 1e-07, %v863_v48 }
 0xf76   :  { %1237 = vlog2.f32 %v864_v49 }
 0xf83   :  { %v1238_v50 = vpop.eup %1237 }
 0xf84   :  { %v866_v51 = vmul.f32 0.6931472, %v1238_v50 }
 0xf86   :  { %868 = vrot.lane.b32.xlu0 %v866_v51, %s1270_s23 }
 0xfe4   :  { %v859_v52 = vpop.permute.xlu1 %858 }
 0xfe5   :  { %1034 = vst.msk [vmem:[%s1494_s2 + $0x30] sm:$0xff] %vm18_vm0, %v859_v52  ;;  %1173 = vmatprep.mubr.msk.f32.mxu1 %vm18_vm0, %v859_v52 }
 0xff8   :  { %v869_v53 = vpop.permute.xlu0 %868 }
 0xff9   :  { %1174 = vmatmul.mubr.msk.f32.vlgmr.msra.gmra.mxu1 %vm18_vm0, %v869_v53 }
0x10b9   :  { %v1175_v54 = vpop.f32.mrf.mxu1 }
0x10ba   :  { %959 = vrot.lane.b32.xlu1 %v1175_v54, %s1268_s21  ;;  %s992_s21 = sshll.u32 %s1271_s0, 4  ;;  %s993_s21 = int_to_ptr.vmem [resolvable:$true] %s992_s21 }
0x10bb   :  { %v940_v56 = vpop.f32.mrf.mxu1  ;;  %s1245_s28 = scalar_lea.vmem %s993_s21, 128  ;;  %p1250_p1 = scmp.lt.s32.totalorder %s993_s21, %s993_s21 }
0x10bc   :  { %v951_v57 = vadd.f32 %v1037_v55, %v940_v56  ;;  %p1246_p0 = scmp.ne.s32.totalorder %s993_s21, %s1245_s28  ;;  %p1251_p2 = scmp.lt.s32.totalorder %s1245_s28, %s1245_s28 }
0x10be   :  { %966 = vrot.lane.b32.xlu0 %v951_v57, %s1269_s22  ;;  %v1038_v62 = vmul.f32 -1.442695, %v951_v57  ;;  %p1252_p3 = por %p1251_p2, %p1250_p1 }
0x10c0   :  { %p1253_p4 = pnand %p1252_p3, %p1246_p0 }
0x112c   :  { %v960_v58 = vpop.permute.xlu1 %959 }
0x112d   :  { %v962_v59 = vadd.f32 %v1037_v55, %v960_v58 }
0x112f   :  { %v963_v60 = vmul.f32 1.442695, %v962_v59 }
0x1130   :  { %v967_v6 = vpop.permute.xlu0 %966 }
0x1131   :  { %1239 = vpow2.f32 %v963_v60 }
0x1132   :  { %1241 = vpow2.f32 %v1038_v62 }
0x113e   :  { %v1240_v61 = vpop.eup %1239 }
0x113f   :  { %972 = vrot.lane.b32.xlu1 %v1240_v61, %s1270_s23  ;;  %v1242_v63 = vpop.eup %1241 }
0x1140   :  { %v955_v2 = vadd.f32 1.0, %v1242_v63 }
0x1142   :  { %1243 = vrcp.f32 %v955_v2 }
0x114f   :  { %v1244_v5 = vpop.eup %1243 }
0x1150   :  { %v970_v7 = vsub.f32 1.0, %v1244_v5  ;;  %v969_v9 = vmul.f32 %v1244_v5, %v967_v6 }
0x11b1   :  { %v973_v8 = vpop.permute.xlu1 %972 }
0x11b2   :  { %v975_v10 = vmul.f32 %v973_v8, %v970_v7 }
0x11b4   :  { %v976_v11 = vadd.f32 %v975_v10, %v969_v9 }
0x11b6   :  { %978 = vrot.lane.b32.xlu0 %v976_v11, %s1270_s23 }
0x1228   :  { %v979_v0 = vpop.permute.xlu0 %978 }
0x1229   :  { %1039 = vst.msk [vmem:[%s1494_s2 + $0x38] sm:$0xff] %vm18_vm0, %v979_v0  ;;  %983 = vst.msk [vmem:[#allocation2] sm:$0xff] %vm18_vm0, %v979_v0 }
0x122a   :  { %1256 = shalt.err (!%p1253_p4)
}
0x122b   :  { %995 = dma.vmem_to_hbm [thread:$0]  %s993_s21, 128, %s1495_s3, [#allocation3]  }
0x122c   :  { %1265 = dma.done.wait [#allocation3], 128  }
0x122d   :  { %1266 = vsyncadd [#allocation3], 4294967168 }
0x122e   :  { %1001 = vsyncpa [#allocation3], 1 }

</bundles_post_ra>
